<compile_context>
chip_gen: v7x
topology: tpu7x:2x2x1
jax: 0.10.0
libtpu: 0.0.40
codegen_flags: <defaults>
</compile_context>

<pallas_src>
import functools

import jax
import jax.numpy as jnp
from jax.experimental import pallas as pl
from jax.experimental.pallas import tpu as pltpu


def dlinear_kernel(x_ref, w_ref, b_ref, o_ref):
    # x_ref: [tb, Dp]   w_ref: [Dp, P] (resident)   b_ref: [1, P] (resident)
    x = x_ref[...].astype(jnp.float32)          # cast (if bf16 input) hides under DMA
    acc = jnp.dot(x, w_ref[...], preferred_element_type=jnp.float32) + b_ref[...]
    o_ref[...] = acc.astype(o_ref.dtype)


def prepare_params(params):
    """One-time fold of the three PyTorch-layout Linear layers into an
    effective weight vector w_eff [D] and scalar bias b_eff.  Off the hot path.
    Kept in f32 (fold changes FP association vs. the unfused module)."""
    wt = params["trend_w"]                      # [T, D]
    ws = params["season_w"]                     # [S, D]
    wf = params["final_w"][0]                   # [T + S]
    T = wt.shape[0]
    wf_t, wf_s = wf[:T], wf[T:]                 # split order == concat order
    w_eff = wt.T @ wf_t + ws.T @ wf_s           # [D]
    b_eff = (params["trend_b"] @ wf_t
             + params["season_b"] @ wf_s
             + params["final_b"][0])            # scalar
    return w_eff.astype(jnp.float32), b_eff.astype(jnp.float32)


def _round_up(n, m):
    return ((n + m - 1) // m) * m


@functools.partial(jax.jit, static_argnames=("block_b",))
def dlinear_forward(x, prepped, *, block_b=16384):
    """x: [batch, input_dim] float (f32 or bf16). prepped: prepare_params output."""
    w_eff, b_eff = prepped
    B, D = x.shape
    assert w_eff.shape == (D,)

    # Lane-dense packing factor.  (B, D) -> (B/P, D*P) is a free contiguous
    # reshape; weight becomes block-diagonal (D*P, P) so column k reduces the
    # k-th original row inside each packed row.
    if D <= 128 and 128 % D == 0 and B % (128 // D) == 0:
        P = 128 // D
    else:
        P = 1                                   # no-copy fallback (lane-sparse tiles)
    Bp, Dp = B // P, D * P
    x2 = x.reshape(Bp, Dp)

    w_pack = jnp.kron(jnp.eye(P, dtype=jnp.float32), w_eff.reshape(D, 1))  # [Dp, P]
    b_row = jnp.broadcast_to(b_eff.reshape(1, 1), (1, P)).astype(jnp.float32)

    # Batch tile: big (per-step overhead), multiple of 8 sublanes, but capped
    # so the grid has >= 2 steps (v7x megacore).  No padding: cdiv grid with a
    # masked partial last block; OOB rows are independent and discarded.
    if Bp <= 8:
        tb = Bp                                 # single block equal to the full dim
    else:
        tb_target = block_b // P if P > 1 else min(block_b, 2048)
        tb = min(_round_up(tb_target, 8), _round_up(pl.cdiv(Bp, 2), 8))
    grid = (pl.cdiv(Bp, tb),)

    out = pl.pallas_call(
        dlinear_kernel,
        out_shape=jax.ShapeDtypeStruct((Bp, P), x.dtype),
        grid=grid,
        in_specs=[
            pl.BlockSpec((tb, Dp), lambda i: (i, 0)),   # x: tiled over batch
            pl.BlockSpec((Dp, P), lambda i: (0, 0)),    # packed W_eff: resident
            pl.BlockSpec((1, P), lambda i: (0, 0)),     # b_eff: resident
        ],
        out_specs=pl.BlockSpec((tb, P), lambda i: (i, 0)),
        compiler_params=pltpu.CompilerParams(
            dimension_semantics=("parallel",),
        ),
    )(x2, w_pack, b_row)
    return out.reshape(B, 1)


def init_params(key, input_dim, trend_size, season_size):
    ks = jax.random.split(key, 6)

    def lin(kw, kb, out_f, in_f):
        bound = 1.0 / jnp.sqrt(in_f)
        w = jax.random.uniform(kw, (out_f, in_f), jnp.float32, -bound, bound)
        b = jax.random.uniform(kb, (out_f,), jnp.float32, -bound, bound)
        return w, b

    tw, tb = lin(ks[0], ks[1], trend_size, input_dim)
    sw, sb = lin(ks[2], ks[3], season_size, input_dim)
    fw, fb = lin(ks[4], ks[5], 1, trend_size + season_size)
    return {"trend_w": tw, "trend_b": tb,
            "season_w": sw, "season_b": sb,
            "final_w": fw, "final_b": fb}


def dlinear_ref(x, p):
    # Unfolded reference matching the PyTorch module exactly.
    trend = x @ p["trend_w"].T + p["trend_b"]
    season = x @ p["season_w"].T + p["season_b"]
    combined = jnp.concatenate([trend, season], axis=1)
    return combined @ p["final_w"].T + p["final_b"]


if __name__ == "__main__":
    key = jax.random.PRNGKey(0)
    k_x, k_p, k_x2, k_x3 = jax.random.split(key, 4)

    input_dim, trend_size, season_size = 32, 16, 16
    params = init_params(k_p, input_dim, trend_size, season_size)
    prepped = prepare_params(params)            # one-time fold, off the hot path

    def check(xv, **kw):
        out = jax.block_until_ready(dlinear_forward(xv, prepped, **kw))
        ref = dlinear_ref(xv, params)
        assert out.shape == (xv.shape[0], 1), out.shape
        err = jnp.max(jnp.abs(out - ref))
        assert jnp.allclose(out, ref, atol=1e-4, rtol=1e-4), f"max abs err {err}"

    # Small batch (packed path, single block covering the whole batch).
    batch = 8
    x = jax.random.normal(k_x, (batch, input_dim), jnp.float32)
    check(x)

    # Multi-step grid with a partial last block (packed path, B % tb != 0).
    x_big = jax.random.normal(k_x2, (300, input_dim), jnp.float32)
    check(x_big, block_b=64)

    # No-copy fallback path (B not a multiple of the pack factor, P = 1).
    x_odd = jax.random.normal(k_x3, (13, input_dim), jnp.float32)
    check(x_odd, block_b=64)

    print("KERNEL_OK")
</pallas_src>

<mosaic_0001>
module attributes {stable_mosaic.version = 11 : i64} {
  func.func @dlinear_kernel(%arg0: i32, %arg1: memref<2x128xf32, #tpu.memory_space<vmem>>, %arg2: memref<128x4xf32, #tpu.memory_space<vmem>>, %arg3: memref<1x4xf32, #tpu.memory_space<vmem>>, %arg4: memref<2x4xf32, #tpu.memory_space<vmem>>) attributes {dimension_semantics = [#tpu.dimension_semantics<parallel>], iteration_bounds = array<i64: 1>, scalar_prefetch = 0 : i64, scratch_operands = 0 : i64, tpu.core_type = #tpu.core_type<tc>, window_params = [{transform_indices = @transform_0, window_bounds = array<i64: 2, 128>}, {pipeline_mode = #tpu.pipeline_mode<synchronous>, transform_indices = @transform_1, window_bounds = array<i64: 128, 4>}, {pipeline_mode = #tpu.pipeline_mode<synchronous>, transform_indices = @transform_2, window_bounds = array<i64: 1, 4>}, {transform_indices = @transform_3, window_bounds = array<i64: 2, 4>}]} {
    %c0 = arith.constant 0 : index
    %c0_0 = arith.constant 0 : index
    %0 = vector.load %arg1[%c0, %c0_0] : memref<2x128xf32, #tpu.memory_space<vmem>>, vector<2x128xf32>
    %c0_1 = arith.constant 0 : index
    %c0_2 = arith.constant 0 : index
    %1 = vector.load %arg2[%c0_1, %c0_2] : memref<128x4xf32, #tpu.memory_space<vmem>>, vector<128x4xf32>
    %cst = arith.constant dense<0.000000e+00> : vector<2x4xf32>
    %2 = tpu.matmul %0, %1, %cst {dimension_numbers = #tpu.dot_dimension_numbers<[1], [0], [0], [1], [0, 0, 1, 1], [], []>} : vector<2x128xf32>, vector<128x4xf32>, vector<2x4xf32> -> vector<2x4xf32>
    %c0_3 = arith.constant 0 : index
    %c0_4 = arith.constant 0 : index
    %3 = vector.load %arg3[%c0_3, %c0_4] : memref<1x4xf32, #tpu.memory_space<vmem>>, vector<1x4xf32>
    %4 = vector.broadcast %3 : vector<1x4xf32> to vector<2x4xf32>
    %5 = arith.addf %2, %4 : vector<2x4xf32>
    %c0_5 = arith.constant 0 : index
    %c0_6 = arith.constant 0 : index
    %6 = vector.load %arg4[%c0_5, %c0_6] : memref<2x4xf32, #tpu.memory_space<vmem>>, vector<2x4xf32>
    tpu.vector_store %arg4[%c0_5, %c0_6], %5 {strides = array<i32>} : memref<2x4xf32, #tpu.memory_space<vmem>>, vector<2x4xf32>,
    return
  }
  func.func @transform_0(%arg0: i32) -> (i32, i32) {
    %c0_i32 = arith.constant 0 : i32
    %c0_i32_0 = arith.constant 0 : i32
    return %arg0, %c0_i32 : i32, i32
  }
  func.func @transform_1(%arg0: i32) -> (i32, i32) {
    %c0_i32 = arith.constant 0 : i32
    %c0_i32_0 = arith.constant 0 : i32
    %c0_i32_1 = arith.constant 0 : i32
    return %c0_i32, %c0_i32_0 : i32, i32
  }
  func.func @transform_2(%arg0: i32) -> (i32, i32) {
    %c0_i32 = arith.constant 0 : i32
    %c0_i32_0 = arith.constant 0 : i32
    %c0_i32_1 = arith.constant 0 : i32
    return %c0_i32, %c0_i32_0 : i32, i32
  }
  func.func @transform_3(%arg0: i32) -> (i32, i32) {
    %c0_i32 = arith.constant 0 : i32
    %c0_i32_0 = arith.constant 0 : i32
    return %arg0, %c0_i32 : i32, i32
  }
}

</mosaic_0001>

<bundles_post_ra>
// kernel: dlinear_forward.1
= control target key start
LH: loop header
LB: loop body
LE: loop exit
PB: predicated region body
PF: predicated region fallthrough
CT: control target
= control target key end

     0   :  { %v194_v0 = vmov 0.0|0.0   ;;  %vm195_vm0 = vmmov 0   ;;  %v196_v4 = vmov 0.0   ;;  %vm108_vm1 = vcmask 25600   ;;  %s274_s1 = inlined_call_operand.vmem [shape: f32[128,4], index: 1, kind: input, shape index: {}]   ;;  %s275_s0 = inlined_call_operand.vmem [shape: f32[2,128], index: 0, kind: input, shape index: {}]   ;;  %s276_s2 = inlined_call_operand.vmem [shape: f32[1,4], index: 2, kind: input, shape index: {}]   ;;  %s277_s3 = inlined_call_operand.vmem [shape: f32[2,4], index: 3, kind: output, shape index: {}]  }
   0x1   :  { %167 = vmatprep.subr.bf16.mxu0 %v194_v0  ;;  %v15_v1 = vld [vmem:[%s274_s1] sm:$0xff]  ;;  %v16_v2 = vld [vmem:[%s274_s1 + $0x8] sm:$0xff]  ;;  %v17_v3 = vld [vmem:[%s274_s1 + $0x10] sm:$0xff]  ;;  %164 = vmatprep.mubr.msk.f32.mxu0 %vm195_vm0, %v196_v4 }
   0x2   :  { %v168_v5 = vpack.c.bf16 %v16_v2, %v15_v1  ;;  %v18_v6 = vld [vmem:[%s274_s1 + $0x18] sm:$0xff]  ;;  %v19_v8 = vld [vmem:[%s274_s1 + $0x20] sm:$0xff]  ;;  %v20_v9 = vld [vmem:[%s274_s1 + $0x28] sm:$0xff] }
   0x3   :  { %v171_v7 = vpack.c.bf16 %v18_v6, %v17_v3  ;;  %v174_v10 = vpack.c.bf16 %v20_v9, %v19_v8  ;;  %v21_v11 = vld [vmem:[%s274_s1 + $0x30] sm:$0xff]  ;;  %v22_v12 = vld [vmem:[%s274_s1 + $0x38] sm:$0xff]  ;;  %v23_v14 = vld [vmem:[%s274_s1 + $0x40] sm:$0xff] }
   0x4   :  { %169 = vmatpush3.bf16.msra.mxu0 %v168_v5  ;;  %v177_v13 = vpack.c.bf16 %v22_v12, %v21_v11  ;;  %v24_v15 = vld [vmem:[%s274_s1 + $0x48] sm:$0xff]  ;;  %v25_v17 = vld [vmem:[%s274_s1 + $0x50] sm:$0xff]  ;;  %v26_v18 = vld [vmem:[%s274_s1 + $0x58] sm:$0xff] }
   0x5   :  { %170 = vmatprep.subr.bf16.mxu0 %v194_v0  ;;  %v180_v16 = vpack.c.bf16 %v24_v15, %v23_v14  ;;  %v183_v19 = vpack.c.bf16 %v26_v18, %v25_v17  ;;  %v27_v20 = vld [vmem:[%s274_s1 + $0x60] sm:$0xff]  ;;  %v28_v21 = vld [vmem:[%s274_s1 + $0x68] sm:$0xff]  ;;  %v29_v23 = vld [vmem:[%s274_s1 + $0x70] sm:$0xff] }
   0x6   :  { %v186_v22 = vpack.c.bf16 %v28_v21, %v27_v20  ;;  %v30_v24 = vld [vmem:[%s274_s1 + $0x78] sm:$0xff]  ;;  %v14_v26 = vld [vmem:[%s275_s0] sm:$0x3] }
   0x7   :  { %v189_v25 = vpack.c.bf16 %v30_v24, %v29_v23  ;;  %v114_v27 = vld [vmem:[%s276_s2] ss:$0 sm:$0xff] }
   0x8   :  { %172 = vmatpush3.bf16.msra.mxu0 %v171_v7 }
   0x9   :  { %173 = vmatprep.subr.bf16.mxu0 %v194_v0 }
   0xc   :  { %175 = vmatpush3.bf16.msra.mxu0 %v174_v10 }
   0xd   :  { %176 = vmatprep.subr.bf16.mxu0 %v194_v0 }
  0x10   :  { %178 = vmatpush3.bf16.msra.mxu0 %v177_v13 }
  0x11   :  { %179 = vmatprep.subr.bf16.mxu0 %v194_v0 }
  0x14   :  { %181 = vmatpush3.bf16.msra.mxu0 %v180_v16 }
  0x15   :  { %182 = vmatprep.subr.bf16.mxu0 %v194_v0 }
  0x18   :  { %184 = vmatpush3.bf16.msra.mxu0 %v183_v19 }
  0x19   :  { %185 = vmatprep.subr.bf16.mxu0 %v194_v0 }
  0x1c   :  { %187 = vmatpush3.bf16.msra.mxu0 %v186_v22 }
  0x1d   :  { %188 = vmatprep.subr.bf16.mxu0 %v194_v0 }
  0x20   :  { %190 = vmatpush3.bf16.msra.mxu0 %v189_v25 }
  0x23   :  { %165 = vmatmul.mubr.f32.vlgmr.msra.gmra.mrb[0].mxu0 %v14_v26 }
  0xf6   :  { %v104_v28 = vpop.f32.mrb[0].mxu0 }
  0xf7   :  { %v105_v29 = vadd.f32 %v114_v27, %v104_v28  ;;  %v166_v30 = vpop.f32.mrb[1].mxu0 }
  0xf9   :  { %109 = vst.msk [vmem:[%s277_s3] sm:$0x3] %vm108_vm1, %v105_v29 }

</bundles_post_ra>
